<compile_context>
chip_gen: v6e
topology: v6e:2x2x1
jax: 0.10.0
libtpu: 0.0.40
codegen_flags: <defaults>
</compile_context>

<pallas_src>
import jax
import jax.numpy as jnp
from jax import lax
from jax.experimental import pallas as pl
from jax.experimental.pallas import tpu as pltpu

_LANES = 128
_SUBLANES = 8
_DEFAULT_BLOCK_BYTES = 4 * 1024 * 1024   # per operand per pipeline buffer
_VMEM_LIMIT_BYTES = 40 * 1024 * 1024     # 2 ops x 2 bufs x 4 MiB = 16 MiB used


def _round_up(x, m):
    return ((x + m - 1) // m) * m


def _make_mse_partial_kernel(block_rows, rows_valid, num_blocks, mask_tail):
    """Build the per-block partial-sum kernel with static tiling constants."""

    def _fold(sq):
        rows, lanes = sq.shape
        # Fold groups of 8 sublanes into one (8, 128) vreg-shaped partial:
        # the reshape only regroups the sublane axis (lane dim stays 128) and
        # the axis-0 sum is elementwise VPU adds of vreg tiles — no XLU reduce
        # and no serial scalar dependency per grid step.
        return sq.reshape(rows // _SUBLANES, _SUBLANES, lanes).sum(axis=0)

    def kernel(x_ref, t_ref, o_ref):
        # Native-dtype reads; f32 math on the VPU.
        d = x_ref[...].astype(jnp.float32) - t_ref[...].astype(jnp.float32)
        sq = d * d

        if mask_tail:
            i = pl.program_id(0)
            is_last = i == num_blocks - 1

            @pl.when(jnp.logical_not(is_last))
            def _():
                o_ref[0] = _fold(sq)

            @pl.when(is_last)
            def _():
                # Rows with global index >= rows_valid are out-of-bounds reads
                # of the pipelined DMA (unspecified data): select them to 0.
                row = i * block_rows + lax.broadcasted_iota(
                    jnp.int32, sq.shape, 0
                )
                o_ref[0] = _fold(
                    jnp.where(row < rows_valid, sq, jnp.float32(0.0))
                )
        else:
            o_ref[0] = _fold(sq)

    return kernel


def mse_loss_pallas(x, target, *, block_bytes=_DEFAULT_BLOCK_BYTES):
    """MSE loss (mean over all elements), computed with a Pallas TPU kernel."""
    assert x.shape == target.shape, "input and target must have the same shape"
    total = x.size
    assert total > 0

    xf = x.reshape(-1)
    tf = target.reshape(-1)

    # Lane-dense (rows, 128) view.  Pad by at most 127 zeros, and only when
    # the element count is ragged (zero padding BOTH operands contributes
    # exactly 0 to the squared-error sum).  Block-alignment padding is handled
    # by an in-kernel mask instead of a wrapper-side copy of the whole tensor.
    rows = pl.cdiv(total, _LANES)
    pad = rows * _LANES - total
    if pad:
        xf = jnp.pad(xf, (0, pad))
        tf = jnp.pad(tf, (0, pad))
    x2 = xf.reshape(rows, _LANES)
    t2 = tf.reshape(rows, _LANES)

    # dtype-aware block sizing: fixed byte budget per operand per buffer, so
    # bf16 inputs stream twice the rows per grid step at the same VMEM
    # footprint; round to the packed sublane tile (8 rows for 32-bit,
    # 16 for 16-bit, 32 for 8-bit dtypes).
    min_itemsize = min(x.dtype.itemsize, target.dtype.itemsize)
    max_itemsize = max(x.dtype.itemsize, target.dtype.itemsize)
    sublane_mult = max(_SUBLANES, 32 // min_itemsize)
    rows_budget = (block_bytes // (_LANES * max_itemsize)) // sublane_mult
    rows_budget = max(sublane_mult, rows_budget * sublane_mult)

    block_rows = min(rows_budget, _round_up(rows, sublane_mult))
    num_blocks = pl.cdiv(rows, block_rows)
    mask_tail = (rows % block_rows) != 0

    kernel = _make_mse_partial_kernel(block_rows, rows, num_blocks, mask_tail)

    partials = pl.pallas_call(
        kernel,
        out_shape=jax.ShapeDtypeStruct(
            (num_blocks, _SUBLANES, _LANES), jnp.float32
        ),
        grid_spec=pltpu.PrefetchScalarGridSpec(
            num_scalar_prefetch=0,
            grid=(num_blocks,),
            in_specs=[
                pl.BlockSpec((block_rows, _LANES), lambda i: (i, 0)),
                pl.BlockSpec((block_rows, _LANES), lambda i: (i, 0)),
            ],
            out_specs=pl.BlockSpec((1, _SUBLANES, _LANES), lambda i: (i, 0, 0)),
        ),
        compiler_params=pltpu.CompilerParams(
            # No grid-carried state -> fully parallel grid (shards across both
            # TensorCores on v7x; harmless on single-TC v5e/v6e).
            dimension_semantics=("parallel",),
            vmem_limit_bytes=_VMEM_LIMIT_BYTES,
        ),
    )(x2, t2)

    # Tiny epilogue reduction + normalization in plain JAX.
    return jnp.sum(partials) / jnp.float32(total)


class ContentLoss:
    """JAX/Pallas port of the PyTorch ContentLoss module."""

    def __init__(self, target):
        # .detach() equivalent: stop gradients through the target.
        self.target = jax.lax.stop_gradient(target)
        self.loss = None

    def __call__(self, x):
        # NOTE: like the PyTorch module, the loss is stored as a side effect;
        # under jax.jit this attribute holds a traced value — read it right
        # after the call (or restructure to return (x, loss)) in jitted code.
        self.loss = mse_loss_pallas(x, self.target)
        return x  # identity passthrough, as in the PyTorch module


if __name__ == "__main__":
    key = jax.random.PRNGKey(0)
    k1, k2, k3, k4, k5, k6 = jax.random.split(key, 6)

    # 1) f32 NCHW conv features (element count a multiple of 128: no pad,
    #    no in-kernel mask).
    N, C, H, W = 2, 4, 16, 16
    x = jax.random.normal(k1, (N, C, H, W), dtype=jnp.float32)
    target = jax.random.normal(k2, (N, C, H, W), dtype=jnp.float32)

    module = ContentLoss(target)
    out = jax.block_until_ready(module(x))
    loss = jax.block_until_ready(module.loss)

    ref = jnp.mean((x - target) ** 2)
    assert jnp.allclose(loss, ref, rtol=1e-5, atol=1e-6), (loss, ref)
    assert out.shape == x.shape and jnp.array_equal(out, x)

    # 2) Ragged bf16 features streamed in native dtype (tiny <=127-element pad
    #    plus in-kernel tail-row mask).
    xb = jax.random.normal(k3, (1, 3, 7, 5), dtype=jnp.bfloat16)
    tb = jax.random.normal(k4, (1, 3, 7, 5), dtype=jnp.bfloat16)
    loss_b = jax.block_until_ready(mse_loss_pallas(xb, tb))
    ref_b = jnp.mean((xb.astype(jnp.float32) - tb.astype(jnp.float32)) ** 2)
    assert jnp.allclose(loss_b, ref_b, rtol=1e-4, atol=1e-6), (loss_b, ref_b)

    # 3) Multi-block grid with a partial last block (exercises the masked
    #    last-block path alongside unmasked blocks) using a small block budget.
    xc = jax.random.normal(k5, (2, 4, 48, 100), dtype=jnp.float32)
    tc = jax.random.normal(k6, (2, 4, 48, 100), dtype=jnp.float32)
    loss_c = jax.block_until_ready(
        mse_loss_pallas(xc, tc, block_bytes=64 * 1024)
    )
    ref_c = jnp.mean((xc - tc) ** 2)
    assert jnp.allclose(loss_c, ref_c, rtol=1e-5, atol=1e-6), (loss_c, ref_c)

    print("KERNEL_OK")
</pallas_src>

<mosaic_0001>
module attributes {stable_mosaic.version = 11 : i64} {
  func.func @kernel(%arg0: i32, %arg1: memref<16x128xf32, #tpu.memory_space<vmem>>, %arg2: memref<16x128xf32, #tpu.memory_space<vmem>>, %arg3: memref<1x8x128xf32, #tpu.memory_space<vmem>>) attributes {dimension_semantics = [#tpu.dimension_semantics<parallel>], iteration_bounds = array<i64: 1>, scalar_prefetch = 0 : i64, scratch_operands = 0 : i64, tpu.core_type = #tpu.core_type<tc>, window_params = [{transform_indices = @transform_0, window_bounds = array<i64: 16, 128>}, {transform_indices = @transform_1, window_bounds = array<i64: 16, 128>}, {transform_indices = @transform_2, window_bounds = array<i64: 1, 8, 128>}]} {
    %c0 = arith.constant 0 : index
    %c0_0 = arith.constant 0 : index
    %0 = vector.load %arg1[%c0, %c0_0] : memref<16x128xf32, #tpu.memory_space<vmem>>, vector<16x128xf32>
    %c0_1 = arith.constant 0 : index
    %c0_2 = arith.constant 0 : index
    %1 = vector.load %arg2[%c0_1, %c0_2] : memref<16x128xf32, #tpu.memory_space<vmem>>, vector<16x128xf32>
    %2 = arith.subf %0, %1 : vector<16x128xf32>
    %3 = arith.mulf %2, %2 : vector<16x128xf32>
    %4 = vector.shape_cast %3 : vector<16x128xf32> to vector<2x8x128xf32>
    %cst = arith.constant dense<0.000000e+00> : vector<8x128xf32>
    %5 = vector.multi_reduction <add>, %4, %cst [0] : vector<2x8x128xf32> to vector<8x128xf32>
    %c0_3 = arith.constant 0 : index
    %c0_4 = arith.constant 0 : index
    %c0_5 = arith.constant 0 : index
    %6 = vector.load %arg3[%c0_3, %c0_4, %c0_5] : memref<1x8x128xf32, #tpu.memory_space<vmem>>, vector<1x8x128xf32>
    %7 = vector.shape_cast %6 : vector<1x8x128xf32> to vector<8x128xf32>
    %8 = vector.shape_cast %5 : vector<8x128xf32> to vector<1x8x128xf32>
    tpu.vector_store %arg3[%c0_3, %c0_4, %c0_5], %8 {strides = array<i32>} : memref<1x8x128xf32, #tpu.memory_space<vmem>>, vector<1x8x128xf32>,
    return
  }
  func.func @transform_0(%arg0: i32) -> (i32, i32) {
    %c0_i32 = arith.constant 0 : i32
    %c0_i32_0 = arith.constant 0 : i32
    return %arg0, %c0_i32 : i32, i32
  }
  func.func @transform_1(%arg0: i32) -> (i32, i32) {
    %c0_i32 = arith.constant 0 : i32
    %c0_i32_0 = arith.constant 0 : i32
    return %arg0, %c0_i32 : i32, i32
  }
  func.func @transform_2(%arg0: i32) -> (i32, i32, i32) {
    %c0_i32 = arith.constant 0 : i32
    %c0_i32_0 = arith.constant 0 : i32
    %c0_i32_1 = arith.constant 0 : i32
    return %arg0, %c0_i32, %c0_i32_0 : i32, i32, i32
  }
}

</mosaic_0001>

<bundles_post_ra>
// kernel: tpu_custom_call.1
= control target key start
LH: loop header
LB: loop body
LE: loop exit
PB: predicated region body
PF: predicated region fallthrough
CT: control target
= control target key end

     0   :  { %7 = vsyncpa [#allocation3], 0  ;;  %s166_s0 = inlined_call_operand.hbm [shape: f32[16,128], index: 0, kind: input, shape index: {}]   ;;  %s167_s1 = inlined_call_operand.hbm [shape: f32[16,128], index: 1, kind: input, shape index: {}]   ;;  %s168_s2 = inlined_call_operand.hbm [shape: f32[1,8,128], index: 2, kind: output, shape index: {}]  }
   0x1   :  { %8 = vsyncpa [#allocation6], 0 }
   0x2   :  { %9 = vsyncpa [#allocation4], 0  ;;  %s137_s9 = smov [#allocation2]  }
   0x3   :  { %s15_s10 = sshll.u32 %s137_s9, 4  ;;  %s16_s10 = int_to_ptr.vmem [resolvable:$true] %s15_s10 }
   0x4   :  { %s79_s11 = scalar_lea.vmem %s16_s10, 256  ;;  %p84_p1 = scmp.lt.s32.totalorder %s16_s10, %s16_s10 }
   0x5   :  { %p80_p0 = scmp.ne.s32.totalorder %s16_s10, %s79_s11  ;;  %p85_p2 = scmp.lt.s32.totalorder %s79_s11, %s79_s11 }
   0x7   :  { %p86_p3 = por %p85_p2, %p84_p1 }
   0x9   :  { %p87_p4 = pnand %p86_p3, %p80_p0 }
   0xb   :  { %90 = shalt.err (!%p87_p4)
}
   0xc   :  { %s138_s12 = smov 128   ;;  %s139_s13 = smov 8  }
   0xd   :  { %21 = dma.hbm_to_vmem [thread:$0]  %s166_s0, 256, %s16_s10, [#allocation3], %s138_s12, %s138_s12, %s139_s13  }
   0xe   :  { %s140_s16 = smov [#allocation5]  }
   0xf   :  { %s27_s17 = sshll.u32 %s140_s16, 4  ;;  %s28_s17 = int_to_ptr.vmem [resolvable:$true] %s27_s17 }
  0x10   :  { %s99_s18 = scalar_lea.vmem %s28_s17, 256  ;;  %p104_p6 = scmp.lt.s32.totalorder %s28_s17, %s28_s17 }
  0x11   :  { %p100_p5 = scmp.ne.s32.totalorder %s28_s17, %s99_s18  ;;  %p105_p7 = scmp.lt.s32.totalorder %s99_s18, %s99_s18 }
  0x13   :  { %p106_p8 = por %p105_p7, %p104_p6 }
  0x15   :  { %p107_p9 = pnand %p106_p8, %p100_p5 }
  0x17   :  { %110 = shalt.err (!%p107_p9)
}
  0x18   :  { %33 = dma.hbm_to_vmem [thread:$0]  %s167_s1, 256, %s28_s17, [#allocation6], %s138_s12, %s138_s12, %s139_s13  }
  0x19   :  { %131 = dma.done.wait [#allocation3], 256  }
  0x1a   :  { %132 = vsyncadd [#allocation3], 4294967040 }
  0x1b   :  { %133 = dma.done.wait [#allocation6], 256  }
  0x1c   :  { %134 = vsyncadd [#allocation6], 4294967040  ;;  %v40_v0 = vld [vmem:[#allocation2] sm:$0xff]  ;;  %v41_v1 = vld [vmem:[#allocation2 + $0x8] sm:$0xff]  ;;  %s141_s0 = smov [#allocation7]  }
  0x1d   :  { %v42_v2 = vld [vmem:[#allocation5] sm:$0xff]  ;;  %v43_v3 = vld [vmem:[#allocation5 + $0x8] sm:$0xff]  ;;  %s56_s21 = sshll.u32 %s141_s0, 4  ;;  %s57_s21 = int_to_ptr.vmem [resolvable:$true] %s56_s21 }
  0x1e   :  { %v44_v4 = vsub.f32 %v40_v0, %v42_v2  ;;  %v45_v5 = vsub.f32 %v41_v1, %v43_v3  ;;  %s111_s22 = scalar_lea.vmem %s57_s21, 128  ;;  %p116_p11 = scmp.lt.s32.totalorder %s57_s21, %s57_s21 }
  0x1f   :  { %p112_p10 = scmp.ne.s32.totalorder %s57_s21, %s111_s22  ;;  %p117_p12 = scmp.lt.s32.totalorder %s111_s22, %s111_s22 }
  0x20   :  { %v46_v6 = vmul.f32 %v44_v4, %v44_v4  ;;  %v47_v7 = vmul.f32 %v45_v5, %v45_v5 }
  0x21   :  { %p118_p13 = por %p117_p12, %p116_p11 }
  0x22   :  { %v48_v8 = vadd.f32 %v47_v7, %v46_v6 }
  0x23   :  { %p119_p0 = pnand %p118_p13, %p112_p10 }
  0x24   :  { %49 = vst [vmem:[#allocation7] sm:$0xff] %v48_v8 }
  0x25   :  { %122 = shalt.err (!%p119_p0)
}
  0x26   :  { %59 = dma.vmem_to_hbm [thread:$0]  %s57_s21, 128, %s168_s2, [#allocation4]  }
  0x27   :  { %135 = dma.done.wait [#allocation4], 128  }
  0x28   :  { %136 = vsyncadd [#allocation4], 4294967168 }
  0x29   :  { %63 = vsyncpa [#allocation3], 1 }
  0x2a   :  { %64 = vsyncpa [#allocation6], 1 }
  0x2b   :  { %65 = vsyncpa [#allocation4], 1 }

</bundles_post_ra>
